<compile_context>
chip_gen: v6e
topology: v6e:2x2x1
jax: 0.10.0
libtpu: 0.0.40
codegen_flags: <defaults>
</compile_context>

<pallas_src>
import jax
import jax.numpy as jnp
from jax.experimental import pallas as pl
from jax.experimental.pallas import tpu as pltpu


def _w8a8_linear_kernel(x_ref, w_ref, b_ref, o_ref):
    # x_ref: (tm, K)  f32   activation tile (full feature dim)
    # w_ref: (tn, K)  bf16  weight tile (tn output channels)
    # b_ref: (1, tn)  f32   bias tile
    # o_ref: (tm, tn) f32   output tile
    x = x_ref[...]

    # per-token absmax fake quantization (n_bits = 8 -> q_max = 127)
    scales = jnp.max(jnp.abs(x), axis=-1, keepdims=True)
    scales = jnp.maximum(scales, 1e-5) * (1.0 / 127.0)
    # reciprocal over only (tm, 1) elements; exact so rounding matches round(x / s)
    inv_scales = pl.reciprocal(scales, approx=False)
    q = jnp.round(x * inv_scales)                  # integers in [-127, 127]

    # single bf16 MXU pass with f32 accumulation (integer q values are exact in bf16)
    y = jax.lax.dot_general(
        q.astype(jnp.bfloat16), w_ref[...],
        dimension_numbers=(((1,), (1,)), ((), ())),
        preferred_element_type=jnp.float32,
    )

    # fold the per-token scales back in on the small (tm, tn) result, add bias
    o_ref[...] = (y * scales + b_ref[...]).astype(o_ref.dtype)


def w8a8_linear(x, weight, bias=None, *, tm=128, tn=256):
    """SmoothQuant W8A8Linear forward.

    x: (..., in_features) float16
    weight: (out_features, in_features) float16
    bias: (1, out_features) float16 or None
    returns: (..., out_features) float16
    """
    orig_shape = x.shape
    K = orig_shape[-1]
    N = weight.shape[0]
    x2d = x.reshape(-1, K)
    M = x2d.shape[0]

    # tile sizes: tm multiple of 8 (sublane), tn multiple of 128 (lane-dense output)
    tm_eff = min(tm, 8 * pl.cdiv(M, 8))
    tn_eff = min(tn, 128 * pl.cdiv(N, 128))
    Mp = tm_eff * pl.cdiv(M, tm_eff)
    Np = tn_eff * pl.cdiv(N, tn_eff)

    # activation f32 (preserves fp16 values exactly for absmax/rounding),
    # weight bf16 (half the HBM/VMEM bytes of f32 + single-pass MXU), bias f32 (tiny)
    x32 = x2d.astype(jnp.float32)
    wb = weight.astype(jnp.bfloat16)
    if bias is None:
        b32 = jnp.zeros((1, N), jnp.float32)
    else:
        b32 = bias.reshape(1, N).astype(jnp.float32)

    if Mp != M:
        x32 = jnp.pad(x32, ((0, Mp - M), (0, 0)))
    if Np != N:
        wb = jnp.pad(wb, ((0, Np - N), (0, 0)))
        b32 = jnp.pad(b32, ((0, 0), (0, Np - N)))

    # weight tile on the OUTER grid axis -> each weight tile is fetched from HBM once
    # and stays resident while the inner axis sweeps the token tiles.
    grid = (Np // tn_eff, Mp // tm_eff)

    out = pl.pallas_call(
        _w8a8_linear_kernel,
        out_shape=jax.ShapeDtypeStruct((Mp, Np), jnp.float32),
        grid_spec=pltpu.PrefetchScalarGridSpec(
            num_scalar_prefetch=0,
            grid=grid,
            in_specs=[
                pl.BlockSpec((tm_eff, K), lambda j, i: (i, 0)),   # activation tile
                pl.BlockSpec((tn_eff, K), lambda j, i: (j, 0)),   # weight tile (resident per j)
                pl.BlockSpec((1, tn_eff), lambda j, i: (0, j)),   # bias tile
            ],
            out_specs=pl.BlockSpec((tm_eff, tn_eff), lambda j, i: (i, j)),
        ),
        compiler_params=pltpu.CompilerParams(
            dimension_semantics=("parallel", "parallel"),
        ),
    )(x32, wb, b32)

    # output_quant is identity (quantize_output=False); cast to module dtype, strip padding
    out = out[:M, :N].astype(jnp.float16)
    return out.reshape(*orig_shape[:-1], N)


def _reference_f32(x, weight, bias):
    """Torch-semantics reference in f32 (exact fake-quant, f32 weights)."""
    x = x.astype(jnp.float32)
    w = weight.astype(jnp.float32)
    b = bias.astype(jnp.float32)
    scales = jnp.max(jnp.abs(x), axis=-1, keepdims=True)
    scales = jnp.maximum(scales, 1e-5) / 127.0
    q_x = jnp.round(x / scales) * scales
    return (q_x @ w.T + b).astype(jnp.float16)


def _reference_kernel_math(x, weight, bias):
    """Mirrors the kernel's math (bf16 weights, scale folded after the matmul)."""
    x = x.astype(jnp.float32)
    wb = weight.astype(jnp.bfloat16).astype(jnp.float32)
    b = bias.astype(jnp.float32)
    scales = jnp.max(jnp.abs(x), axis=-1, keepdims=True)
    scales = jnp.maximum(scales, 1e-5) / 127.0
    inv = 1.0 / scales
    q = jnp.round(x * inv)
    y = (q @ wb.T) * scales + b
    return y.astype(jnp.float16)


if __name__ == "__main__":
    # small shapes consistent with a Linear layer; exercise M padding (144 -> 256)
    # and N padding (192 -> 256).
    batch, seq, in_features, out_features = 2, 72, 256, 192

    key = jax.random.PRNGKey(0)
    kx, kw, kb = jax.random.split(key, 3)

    weight = jax.random.normal(kw, (out_features, in_features), dtype=jnp.float32).astype(jnp.float16)
    bias = (0.1 * jax.random.normal(kb, (1, out_features), dtype=jnp.float32)).astype(jnp.float16)
    x = jax.random.normal(kx, (batch, seq, in_features), dtype=jnp.float32).astype(jnp.float16)

    y = w8a8_linear(x, weight, bias)
    y = jax.block_until_ready(y)

    assert y.shape == (batch, seq, out_features)
    assert y.dtype == jnp.float16

    x2d = x.reshape(-1, in_features)
    y_kernel_math = _reference_kernel_math(x2d, weight, bias).reshape(y.shape)
    y_full_f32 = _reference_f32(x2d, weight, bias).reshape(y.shape)

    yf = y.astype(jnp.float32)
    # tight check: same math as the kernel (bf16 weights) -> only accumulation-order noise
    assert jnp.allclose(yf, y_kernel_math.astype(jnp.float32), atol=1e-1, rtol=2e-2), \
        "mismatch vs kernel-math reference"
    # sanity check vs the exact f32 torch-semantics path (looser: bf16 weight rounding)
    assert jnp.allclose(yf, y_full_f32.astype(jnp.float32), atol=3.5e-1, rtol=2e-2), \
        "mismatch vs f32 torch-semantics reference"

    print("KERNEL_OK")
</pallas_src>

<mosaic_0001>
module attributes {stable_mosaic.version = 11 : i64} {
  func.func @_w8a8_linear_kernel(%arg0: i32, %arg1: i32, %arg2: memref<128x256xf32, #tpu.memory_space<vmem>>, %arg3: memref<256x256xbf16, #tpu.memory_space<vmem>>, %arg4: memref<1x256xf32, #tpu.memory_space<vmem>>, %arg5: memref<128x256xf32, #tpu.memory_space<vmem>>) attributes {dimension_semantics = [#tpu.dimension_semantics<parallel>, #tpu.dimension_semantics<parallel>], iteration_bounds = array<i64: 1, 2>, scalar_prefetch = 0 : i64, scratch_operands = 0 : i64, tpu.core_type = #tpu.core_type<tc>, window_params = [{transform_indices = @transform_0, window_bounds = array<i64: 128, 256>}, {transform_indices = @transform_1, window_bounds = array<i64: 256, 256>}, {transform_indices = @transform_2, window_bounds = array<i64: 1, 256>}, {transform_indices = @transform_3, window_bounds = array<i64: 128, 256>}]} {
    %c0 = arith.constant 0 : index
    %c0_0 = arith.constant 0 : index
    %0 = vector.load %arg2[%c0, %c0_0] : memref<128x256xf32, #tpu.memory_space<vmem>>, vector<128x256xf32>
    %1 = math.absf %0 : vector<128x256xf32>
    %cst = arith.constant dense<0xFF800000> : vector<128xf32>
    %2 = vector.multi_reduction <maximumf>, %1, %cst [1] : vector<128x256xf32> to vector<128xf32>
    %3 = vector.shape_cast %2 : vector<128xf32> to vector<128x1xf32>
    %cst_1 = arith.constant 9.99999974E-6 : f32
    %4 = vector.broadcast %cst_1 : f32 to vector<128x1xf32>
    %5 = arith.maximumf %3, %4 : vector<128x1xf32>
    %cst_2 = arith.constant 0.00787401571 : f32
    %6 = vector.broadcast %cst_2 : f32 to vector<128x1xf32>
    %7 = arith.mulf %5, %6 : vector<128x1xf32>
    %8 = tpu.reciprocal %7 : vector<128x1xf32> -> vector<128x1xf32>
    %9 = vector.broadcast %8 : vector<128x1xf32> to vector<128x256xf32>
    %10 = arith.mulf %0, %9 : vector<128x256xf32>
    %11 = math.roundeven %10 : vector<128x256xf32>
    %12 = arith.truncf %11 : vector<128x256xf32> to vector<128x256xbf16>
    %c0_3 = arith.constant 0 : index
    %c0_4 = arith.constant 0 : index
    %13 = vector.load %arg3[%c0_3, %c0_4] : memref<256x256xbf16, #tpu.memory_space<vmem>>, vector<256x256xbf16>
    %cst_5 = arith.constant dense<0.000000e+00> : vector<128x256xf32>
    %14 = tpu.matmul %12, %13, %cst_5 {dimension_numbers = #tpu.dot_dimension_numbers<[1], [1], [0], [0], [0, 0, 1, 0], [], []>} : vector<128x256xbf16>, vector<256x256xbf16>, vector<128x256xf32> -> vector<128x256xf32>
    %15 = vector.broadcast %7 : vector<128x1xf32> to vector<128x256xf32>
    %16 = arith.mulf %14, %15 : vector<128x256xf32>
    %c0_6 = arith.constant 0 : index
    %c0_7 = arith.constant 0 : index
    %17 = vector.load %arg4[%c0_6, %c0_7] : memref<1x256xf32, #tpu.memory_space<vmem>>, vector<1x256xf32>
    %18 = vector.broadcast %17 : vector<1x256xf32> to vector<128x256xf32>
    %19 = arith.addf %16, %18 : vector<128x256xf32>
    %c0_8 = arith.constant 0 : index
    %c0_9 = arith.constant 0 : index
    %20 = vector.load %arg5[%c0_8, %c0_9] : memref<128x256xf32, #tpu.memory_space<vmem>>, vector<128x256xf32>
    tpu.vector_store %arg5[%c0_8, %c0_9], %19 {strides = array<i32>} : memref<128x256xf32, #tpu.memory_space<vmem>>, vector<128x256xf32>,
    return
  }
  func.func @transform_0(%arg0: i32, %arg1: i32) -> (i32, i32) {
    %c0_i32 = arith.constant 0 : i32
    %c0_i32_0 = arith.constant 0 : i32
    return %arg1, %c0_i32 : i32, i32
  }
  func.func @transform_1(%arg0: i32, %arg1: i32) -> (i32, i32) {
    %c0_i32 = arith.constant 0 : i32
    %c0_i32_0 = arith.constant 0 : i32
    return %arg0, %c0_i32 : i32, i32
  }
  func.func @transform_2(%arg0: i32, %arg1: i32) -> (i32, i32) {
    %c0_i32 = arith.constant 0 : i32
    %c0_i32_0 = arith.constant 0 : i32
    return %c0_i32, %arg0 : i32, i32
  }
  func.func @transform_3(%arg0: i32, %arg1: i32) -> (i32, i32) {
    %c0_i32 = arith.constant 0 : i32
    return %arg1, %arg0 : i32, i32
  }
}

</mosaic_0001>

<bundles_post_ra>
// kernel: tpu_custom_call.1
= control target key start
LH: loop header
LB: loop body
LE: loop exit
PB: predicated region body
PF: predicated region fallthrough
CT: control target
= control target key end

     0   :  { %8 = vsyncpa [#allocation3], 0  ;;  %s2416_s0 = inlined_call_operand.hbm [shape: f32[256,256], index: 0, kind: input, shape index: {}]   ;;  %s2417_s1 = inlined_call_operand.hbm [shape: bf16[256,256], index: 1, kind: input, shape index: {}]   ;;  %s2418_s2 = inlined_call_operand.vmem [shape: f32[1,256], index: 2, kind: input, shape index: {}]   ;;  %s2419_s3 = inlined_call_operand.hbm [shape: f32[256,256], index: 3, kind: output, shape index: {}]  }
   0x1   :  { %10 = vsyncpa [#allocation3 + $0x1], 0 }
   0x2   :  { %11 = vsyncpa [#allocation6], 0 }
   0x3   :  { %12 = vsyncpa [#allocation4], 0 }
   0x4   :  { %14 = vsyncpa [#allocation4 + $0x1], 0  ;;  %s1701_s12 = smov 0   ;;  %s1703_s13 = smov 0  }
   0x5   :  { %s1705_s14 = smov 0   ;;  %s1707_s15 = smov 0  }
   0x6   :  { %s1709_s16 = smov 0   ;;  %s1711_s17 = smov 0  }
   0x7 LB: > { %s1029_s18 = sadd.s32 4294967295, %s1670_s17   ;;  %s1030_s19 = sadd.s32 4294967294, %s1670_s17   ;;  %s1670_s17 = sphi %s1711_s17, %s20_s17   ;;  %s1666_s16 = sphi %s1709_s16, %s2523_s16   ;;  %s1662_s15 = sphi %s1707_s15, %s2522_s15   ;;  %s1658_s14 = sphi %s1705_s14, %s2521_s14   ;;  %s1654_s13 = sphi %s1703_s13, %s2520_s13   ;;  %s1650_s12 = sphi %s1701_s12, %s2519_s12  }
   0x8   : > { %p52_p0 = scmp.ne.s32.totalorder %s1654_s13, %s1650_s12  ;;  %p1735_p1 = scmp.eq.s32.totalorder %s1029_s18, 0 }
   0x9   : > { %p1739_p2 = scmp.eq.s32.totalorder %s1029_s18, 1  ;;  %p136_p3 = scmp.eq.s32.totalorder %s1030_s19, 1 }
   0xa   : > { %p1745_p4 = por %p1735_p1, %p52_p0  ;;  %p1031_p5 = scmp.ge.s32.totalorder %s1670_s17, 1 }
   0xb   : > { %p1750_p6 = por %p136_p3, %p52_p0  ;;  %p143_p7 = scmp.lt.s32.totalorder %s1670_s17, 3 }
   0xc   : > { %s2445_s22 = scalar_select %p1745_p4, 1, 0 }
   0xd   : > { %s2446_s23 = scalar_select %p1750_p6, 1, 0 }
   0xe   : > { %p1755_p8 = pnand %p1031_p5, %p143_p7  ;;  %s1672_s25 = smov [#allocation5]  }
   0xf   : > { %s159_s26 = sshll.u32 %s1672_s25, 4  ;;  %s29_s28 = sadd.s32 1, %s1666_s16  ;;  %s160_s26 = int_to_ptr.vmem [resolvable:$true] %s159_s26 }
  0x10   : > { %p1381_p9 = pneg %p1755_p8  ;;  %s1543_s29 = scalar_lea.vmem %s160_s26, 4096 }
  0x11   : > { %p1544_p13 = scmp.ne.s32.totalorder %s160_s26, %s1543_s29  ;;  %p1551_p5 = scmp.lt.s32.totalorder %s160_s26, %s160_s26 }
  0x12   : > { %p1764_p11 = pnand %p1381_p9, %p1735_p1  ;;  %p1552_p7 = scmp.lt.s32.totalorder %s1543_s29, %s1543_s29 }
  0x14   : > { %p1534_p12 = pneg %p1764_p11  ;;  %p1553_p6 = por %p1552_p7, %p1551_p5 }
  0x16   : > { %p1546_p0 = pnand %p1544_p13, %p1534_p12 }
  0x18   : > { %p1547_p3 = pneg %p1546_p0 }
  0x1a   : > { %p1554_p4 = pnand %p1553_p6, %p1547_p3 }
  0x1c   : > { %1557 = shalt.err (!%p1554_p4)
}
  0x1d   : > { %s1673_s30 = smov 128   ;;  %s1674_s4 = smov 8  }
  0x1e   : > { %1384 = dma.hbm_to_vmem [thread:$0]  (!%p1764_p11), %s2417_s1, 4096, %s160_s26, [#allocation6], %s1673_s30, %s1673_s30, %s1674_s4  }
  0x1f   : > { %p30_p6 = scmp.ge.s32.totalorder %s29_s28, 2  ;;  %s39_s7 = sadd.s32 1, %s1658_s14 }
  0x20   : > { %p46_p4 = scmp.ne.s32.totalorder %s1658_s14, %s1654_s13  ;;  %p47_p9 = scmp.eq.s32.totalorder %s1670_s17, 0 }
  0x21   : > { %s2525_s28 = smov (%p30_p6, %s29_s28), 0  ;;  %p1394_p0 = scmp.lt.s32.totalorder %s1670_s17, 2 }
  0x22   : > { %p1782_p12 = por %p47_p9, %p46_p4  ;;  %p1788_p13 = por %p1739_p2, %p46_p4 }
  0x23   : > { %s36_s10 = ssub.s32 %s1666_s16, %s2525_s28  ;;  %s181_s11 = sand.u32 1, %s1658_s14  }
  0x24   : > { %p37_p11 = scmp.eq.s32.totalorder %s36_s10, 0  ;;  %s1035_s18 = sshll.u32 %s181_s11, 8 }
  0x25   : > { %s1082_s25 = sshll.u32 %s1666_s16, 12  ;;  %s185_s30 = scalar_lea.vmem [#allocation2], %s1035_s18 }
  0x26   : > { %s1797_s19 = scalar_select %p37_p11, %s1658_s14, %s39_s7  }
  0x27   : > { %s192_s29 = scalar_lea.hbm %s2416_s0, %s1082_s25  ;;  %s193_s4 = sshll.u32 %s185_s30, 4  ;;  %s194_s4 = int_to_ptr.vmem [resolvable:$true] %s193_s4 }
  0x28   : > { %p1805_p2 = pnand %p1394_p0, %p1782_p12  ;;  %s182_s5 = scalar_lea.sflag [#allocation3], %s181_s11 }
  0x29   : > { %s1571_s6 = scalar_lea.vmem %s194_s4, 4096  ;;  %s1675_s7 = smov [#allocation2]  }
  0x2a   : > { %p1560_p3 = pneg %p1805_p2  ;;  %p1572_p5 = scmp.ne.s32.totalorder %s194_s4, %s1571_s6 }
  0x2b   : > { %s1576_s10 = sshll.u32 %s1675_s7, 4  ;;  %s1577_s10 = int_to_ptr.vmem [resolvable:$false] %s1576_s10 }
  0x2c   : > { %p1574_p7 = pnand %p1572_p5, %p1560_p3  ;;  %s1578_s25 = scalar_lea.vmem %s1577_s10, 8192 }
  0x2d   : > { %p1579_p4 = scmp.lt.s32.totalorder %s194_s4, %s1577_s10  ;;  %p1580_p9 = scmp.lt.s32.totalorder %s1578_s25, %s1571_s6 }
  0x2e   : > { %p1575_p6 = pneg %p1574_p7 }
  0x2f   : > { %p1581_p11 = por %p1580_p9, %p1579_p4 }
  0x31   : > { %p1582_p10 = pnand %p1581_p11, %p1575_p6 }
  0x33   : > { %1585 = shalt.err (!%p1582_p10)
}
  0x34   : > { %s1676_s8 = smov 256   ;;  %s1677_s18 = smov 16  }
  0x35   : > { %1388 = dma.hbm_to_vmem [thread:$0]  (!%p1805_p2), %s192_s29, 4096, %s194_s4, %s182_s5, %s1676_s8, %s1676_s8, %s1677_s18  }
  0x36   : > { %205 = sbr.rel (%p1755_p8) target bundleno = 530 (0x212), region = 32 }
  0x3b   : > { %s1816_s11 = sand.u32 1, %s1654_s13   ;;  %p2452_p10 = scmp.ne.s32.totalorder %s2445_s22, 0 }
  0x3c   : > { %s1040_s26 = sshll.u32 %s1816_s11, 8  ;;  %s208_s27 = scalar_lea.sflag [#allocation3], %s1816_s11 }
  0x3d   : > { %s1822_s30 = scalar_lea.vmem [#allocation2], %s1040_s26 }
  0x3e   : > { %1637 = dma.done.wait (%p2452_p10), %s208_s27, 4096  }
  0x3f   : > { %1639 = vsyncadd (%p2452_p10), %s208_s27, 4294963200 }
  0x40   : > { %1641 = dma.done.wait (%p1735_p1), [#allocation6], 4096  }
  0x41   : > { %1643 = vsyncadd (%p1735_p1), [#allocation6], 4294963200  ;;  %v1833_v0 = vld [vmem:[%s1822_s30 + $0x80] sm:$0xff]  ;;  %v1836_v1 = vld [vmem:[%s1822_s30 + $0x88] sm:$0xff]  ;;  %s2267_s24 = scalar_lea.vmem [#allocation7], %s1040_s26  ;;  %s1084_s29 = sshll.u32 %s1662_s15, 12 }
  0x42   : > { %v1839_v2 = vld [vmem:[%s1822_s30] sm:$0xff]  ;;  %v299_v3 = vand.u32 2147483647, %v1833_v0  ;;  %v300_v4 = vand.u32 2147483647, %v1836_v1  ;;  %v1844_v5 = vld [vmem:[%s1822_s30 + $0x8] sm:$0xff]  ;;  %s2363_s6 = scalar_lea.hbm %s2419_s3, %s1084_s29 }
  0x43   : > { %v1847_v6 = vld [vmem:[%s1822_s30 + $0x90] sm:$0xff]  ;;  %v283_v7 = vand.u32 2147483647, %v1839_v2  ;;  %v284_v8 = vand.u32 2147483647, %v1844_v5  ;;  %v1852_v9 = vld [vmem:[%s1822_s30 + $0x98] sm:$0xff] }
  0x44   : > { %v1855_v10 = vld [vmem:[%s1822_s30 + $0x10] sm:$0xff]  ;;  %v339_v11 = vmax.f32.f32 %v299_v3, %v300_v4  ;;  %v301_v12 = vand.u32 2147483647, %v1847_v6  ;;  %v302_v13 = vand.u32 2147483647, %v1852_v9  ;;  %v1860_v14 = vld [vmem:[%s1822_s30 + $0x18] sm:$0xff] }
  0x45   : > { %v1863_v15 = vld [vmem:[%s1822_s30 + $0x30] sm:$0xff]  ;;  %v315_v16 = vmax.f32.f32 %v283_v7, %v284_v8  ;;  %v285_v17 = vand.u32 2147483647, %v1855_v10  ;;  %v286_v18 = vand.u32 2147483647, %v1860_v14  ;;  %v1868_v19 = vld [vmem:[%s1822_s30 + $0x38] sm:$0xff] }
  0x46   : > { %v1871_v20 = vld [vmem:[%s1822_s30 + $0x20] sm:$0xff]  ;;  %340 = vmax.xlane.f32.xlu1 %v339_v11  ;;  %v342_v21 = vmax.f32.f32 %v301_v12, %v302_v13  ;;  %v289_v22 = vand.u32 2147483647, %v1863_v15  ;;  %v290_v23 = vand.u32 2147483647, %v1868_v19  ;;  %v1876_v24 = vld [vmem:[%s1822_s30 + $0x28] sm:$0xff] }
  0x47   : > { %316 = vmax.xlane.f32.xlu0 %v315_v16  ;;  %v318_v25 = vmax.f32.f32 %v285_v17, %v286_v18  ;;  %v287_v26 = vand.u32 2147483647, %v1871_v20  ;;  %v288_v27 = vand.u32 2147483647, %v1876_v24  ;;  %v1881_v28 = vld [vmem:[%s1822_s30 + $0xb0] sm:$0xff]  ;;  %v1884_v29 = vld [vmem:[%s1822_s30 + $0xb8] sm:$0xff] }
  0x48   : > { %v1887_v30 = vld [vmem:[%s1822_s30 + $0xa0] sm:$0xff]  ;;  %v1890_v31 = vld [vmem:[%s1822_s30 + $0xa8] sm:$0xff]  ;;  %v324_v32 = vmax.f32.f32 %v289_v22, %v290_v23  ;;  %v305_v33 = vand.u32 2147483647, %v1881_v28  ;;  %v306_v34 = vand.u32 2147483647, %v1884_v29 }
  0x49   : > { %v321_v35 = vmax.f32.f32 %v287_v26, %v288_v27  ;;  %v303_v36 = vand.u32 2147483647, %v1887_v30  ;;  %v304_v37 = vand.u32 2147483647, %v1890_v31  ;;  %v1897_v38 = vld [vmem:[%s1822_s30 + $0x50] sm:$0xff]  ;;  %v1900_v39 = vld [vmem:[%s1822_s30 + $0x58] sm:$0xff] }
  0x4a   : > { %343 = vmax.xlane.f32.xlu1 %v342_v21  ;;  %v1903_v40 = vld [vmem:[%s1822_s30 + $0x40] sm:$0xff]  ;;  %v1906_v41 = vld [vmem:[%s1822_s30 + $0x48] sm:$0xff]  ;;  %v1909_v42 = vld [vmem:[%s1822_s30 + $0xd0] sm:$0xff]  ;;  %v348_v44 = vmax.f32.f32 %v305_v33, %v306_v34  ;;  %v293_v45 = vand.u32 2147483647, %v1897_v38  ;;  %s921_s4 = sshll.u32 %s2267_s24, 4  ;;  %s2365_s4 = int_to_ptr.vmem [resolvable:$true] %s921_s4 }
  0x4b   : > { %319 = vmax.xlane.f32.xlu0 %v318_v25  ;;  %v1912_v43 = vld [vmem:[%s1822_s30 + $0xd8] sm:$0xff]  ;;  %v294_v46 = vand.u32 2147483647, %v1900_v39  ;;  %v1917_v47 = vld [vmem:[%s1822_s30 + $0xc0] sm:$0xff]  ;;  %v345_v48 = vmax.f32.f32 %v303_v36, %v304_v37  ;;  %v291_v49 = vand.u32 2147483647, %v1903_v40 }
  0x4c   : > { %v292_v50 = vand.u32 2147483647, %v1906_v41  ;;  %v309_v51 = vand.u32 2147483647, %v1909_v42  ;;  %v310_v52 = vand.u32 2147483647, %v1912_v43 }
  0x4d   : > { %v1924_v53 = vld [vmem:[%s1822_s30 + $0xc8] sm:$0xff]  ;;  %v307_v54 = vand.u32 2147483647, %v1917_v47  ;;  %v1928_v55 = vld [vmem:[%s1822_s30 + $0x70] sm:$0xff]  ;;  %v330_v56 = vmax.f32.f32 %v293_v45, %v294_v46  ;;  %v1932_v61 = vld [vmem:[%s1822_s30 + $0x78] sm:$0xff]  ;;  %s905_s15 = scalar_lea.sflag [#allocation4], %s1816_s11 }
  0x4e   : > { %325 = vmax.xlane.f32.xlu1 %v324_v32  ;;  %v1452_v57 = vld [vmem:[#allocation5 + $0x74] ss:$8 sps:$4 sm:$0xff]   ;;  %v1454_v58 = vld [vmem:[#allocation5 + $0x70] ss:$8 sps:$4 sm:$0xff]   ;;  %v327_v59 = vmax.f32.f32 %v291_v49, %v292_v50  ;;  %v308_v60 = vand.u32 2147483647, %v1924_v53  ;;  %v354_v7 = vmax.f32.f32 %v309_v51, %v310_v52 }
  0x4f   : > { %322 = vmax.xlane.f32.xlu0 %v321_v35  ;;  %v1455_v62 = vld [vmem:[#allocation5 + $0x64] ss:$8 sps:$4 sm:$0xff]   ;;  %683 = vmatprep.subr.bf16.mxu0 %v1452_v57  ;;  %v297_v4 = vand.u32 2147483647, %v1928_v55  ;;  %v298_v8 = vand.u32 2147483647, %v1932_v61 }
  0x50   : > { %v1935_v63 = vld [vmem:[%s1822_s30 + $0x60] sm:$0xff]  ;;  %v1938_v3 = vld [vmem:[%s1822_s30 + $0x68] sm:$0xff]  ;;  %1085 = vmatprep.subr.bf16.mxu1 %v1452_v57  ;;  %684 = vmatpush1.bf16.xpose.msra.mxu0 %v1454_v58  ;;  %v1943_v11 = vld [vmem:[%s1822_s30 + $0xf0] sm:$0xff]  ;;  %v351_v12 = vmax.f32.f32 %v307_v54, %v308_v60  ;;  %s1586_s7 = scalar_lea.vmem %s2365_s4, 4096  ;;  %s1678_s10 = smov [#allocation7]  }
  0x51   : > { %1101 = vmatpush1.bf16.xpose.msra.mxu1 %v1454_v58  ;;  %685 = vmatprep.subr.bf16.mxu0 %v1455_v62  ;;  %v295_v13 = vand.u32 2147483647, %v1935_v63  ;;  %v296_v16 = vand.u32 2147483647, %v1938_v3  ;;  %v1948_v17 = vld [vmem:[%s1822_s30 + $0xf8] sm:$0xff]  ;;  %v1951_v18 = vld [vmem:[%s1822_s30 + $0xe0] sm:$0xff]  ;;  %v336_v25 = vmax.f32.f32 %v297_v4, %v298_v8  ;;  %p1587_p1 = scmp.ne.s32.totalorder %s2365_s4, %s1586_s7 }
  0x52   : > { %349 = vmax.xlane.f32.xlu1 %v348_v44  ;;  %1086 = vmatprep.subr.bf16.mxu1 %v1455_v62  ;;  %v1954_v21 = vld [vmem:[%s1822_s30 + $0xe8] sm:$0xff]  ;;  %v313_v22 = vand.u32 2147483647, %v1943_v11  ;;  %v314_v26 = vand.u32 2147483647, %v1948_v17  ;;  %s1590_s25 = sshll.u32 %s1678_s10, 4  ;;  %s1591_s25 = int_to_ptr.vmem [resolvable:$false] %s1590_s25 }
  0x53   : > { %346 = vmax.xlane.f32.xlu0 %v345_v48  ;;  %v1457_v23 = vld [vmem:[#allocation5 + $0x60] ss:$8 sps:$4 sm:$0xff]   ;;  %v1458_v27 = vld [vmem:[#allocation5 + $0x54] ss:$8 sps:$4 sm:$0xff]   ;;  %v333_v32 = vmax.f32.f32 %v295_v13, %v296_v16  ;;  %v311_v33 = vand.u32 2147483647, %v1951_v18  ;;  %p1588_p8 = pnand %p1587_p1, %p1788_p13  ;;  %p1593_p0 = scmp.lt.s32.totalorder %s2365_s4, %s1591_s25 }
  0x54   : > { %v312_v34 = vand.u32 2147483647, %v1954_v21  ;;  %v360_v35 = vmax.f32.f32 %v313_v22, %v314_v26  ;;  %v1460_v37 = vld [vmem:[#allocation5 + $0x50] ss:$8 sps:$4 sm:$0xff]   ;;  %v1461_v44 = vld [vmem:[#allocation5 + $0x44] ss:$8 sps:$4 sm:$0xff]  }
  0x55   : > { %v1463_v45 = vld [vmem:[#allocation5 + $0x40] ss:$8 sps:$4 sm:$0xff]   ;;  %v1464_v46 = vld [vmem:[#allocation5 + $0x34] ss:$8 sps:$4 sm:$0xff]   ;;  %v1466_v48 = vld [vmem:[#allocation5 + $0x30] ss:$8 sps:$4 sm:$0xff]   ;;  %p1589_p12 = pneg %p1588_p8 }
  0x56   : > { %331 = vmax.xlane.f32.xlu1 %v330_v56  ;;  %v357_v36 = vmax.f32.f32 %v311_v33, %v312_v34  ;;  %v1467_v49 = vld [vmem:[#allocation5 + $0x24] ss:$8 sps:$4 sm:$0xff]   ;;  %v1469_v50 = vld [vmem:[#allocation5 + $0x20] ss:$8 sps:$4 sm:$0xff]   ;;  %v1470_v51 = vld [vmem:[#allocation5 + $0x14] ss:$8 sps:$4 sm:$0xff]  }
  0x57   : > { %328 = vmax.xlane.f32.xlu0 %v327_v59  ;;  %v1472_v52 = vld [vmem:[#allocation5 + $0x10] ss:$8 sps:$4 sm:$0xff]   ;;  %v1473_v54 = vld [vmem:[#allocation5 + $0x4] ss:$8 sps:$4 sm:$0xff]   ;;  %v1475_v56 = vld [vmem:[#allocation5] ss:$8 sps:$4 sm:$0xff]  }
  0x58   : > { %686 = vmatpush1.bf16.xpose.msra.mxu0 %v1457_v23  ;;  %v1476_v57 = vld [vmem:[#allocation5 + $0xf4] ss:$8 sps:$4 sm:$0xff]   ;;  %v1478_v58 = vld [vmem:[#allocation5 + $0xf0] ss:$8 sps:$4 sm:$0xff]   ;;  %v1479_v59 = vld [vmem:[#allocation5 + $0xe4] ss:$8 sps:$4 sm:$0xff]  }
  0x59   : > { %1102 = vmatpush1.bf16.xpose.msra.mxu1 %v1457_v23  ;;  %687 = vmatprep.subr.bf16.mxu0 %v1458_v27  ;;  %v1481_v60 = vld [vmem:[#allocation5 + $0xe0] ss:$8 sps:$4 sm:$0xff]   ;;  %v1482_v62 = vld [vmem:[#allocation5 + $0xd4] ss:$8 sps:$4 sm:$0xff]   ;;  %v1484_v4 = vld [vmem:[#allocation5 + $0xd0] ss:$8 sps:$4 sm:$0xff]  }
  0x5a   : > { %355 = vmax.xlane.f32.xlu1 %v354_v7  ;;  %1087 = vmatprep.subr.bf16.mxu1 %v1458_v27  ;;  %v1485_v7 = vld [vmem:[#allocation5 + $0xc4] ss:$8 sps:$4 sm:$0xff]   ;;  %v1487_v8 = vld [vmem:[#allocation5 + $0xc0] ss:$8 sps:$4 sm:$0xff]   ;;  %v1490_v13 = vld [vmem:[#allocation5 + $0xb0] ss:$8 sps:$4 sm:$0xff]  }
  0x5b   : > { %352 = vmax.xlane.f32.xlu0 %v351_v12  ;;  %v1488_v12 = vld [vmem:[#allocation5 + $0xb4] ss:$8 sps:$4 sm:$0xff]   ;;  %v1491_v16 = vld [vmem:[#allocation5 + $0xa4] ss:$8 sps:$4 sm:$0xff]   ;;  %v1493_v22 = vld [vmem:[#allocation5 + $0xa0] ss:$8 sps:$4 sm:$0xff]  }
  0x5c   : > { %v1494_v23 = vld [vmem:[#allocation5 + $0x94] ss:$8 sps:$4 sm:$0xff]   ;;  %v1497_v26 = vld [vmem:[#allocation5 + $0x84] ss:$8 sps:$4 sm:$0xff]   ;;  %v1499_v27 = vld [vmem:[#allocation5 + $0x80] ss:$8 sps:$4 sm:$0xff]  }
  0x5d   : > { %s1592_s8 = scalar_lea.vmem %s1591_s25, 8192 }
  0x5e   : > { %337 = vmax.xlane.f32.xlu1 %v336_v25  ;;  %v1496_v25 = vld [vmem:[#allocation5 + $0x90] ss:$8 sps:$4 sm:$0xff]   ;;  %p1594_p2 = scmp.lt.s32.totalorder %s1592_s8, %s1586_s7 }
  0x5f   : > { %334 = vmax.xlane.f32.xlu0 %v333_v32 }
  0x60   : > { %688 = vmatpush1.bf16.xpose.msra.mxu0 %v1460_v37  ;;  %p1595_p3 = por %p1594_p2, %p1593_p0 }
  0x61   : > { %1103 = vmatpush1.bf16.xpose.msra.mxu1 %v1460_v37  ;;  %689 = vmatprep.subr.bf16.mxu0 %v1461_v44 }
  0x62   : > { %361 = vmax.xlane.f32.xlu1 %v360_v35  ;;  %1088 = vmatprep.subr.bf16.mxu1 %v1461_v44  ;;  %p1596_p5 = pnand %p1595_p3, %p1589_p12 }
  0x63   : > { %358 = vmax.xlane.f32.xlu0 %v357_v36 }
  0x68   : > { %690 = vmatpush1.bf16.xpose.msra.mxu0 %v1463_v45 }
  0x69   : > { %1104 = vmatpush1.bf16.xpose.msra.mxu1 %v1463_v45  ;;  %691 = vmatprep.subr.bf16.mxu0 %v1464_v46 }
  0x6a   : > { %1089 = vmatprep.subr.bf16.mxu1 %v1464_v46 }
  0x70   : > { %692 = vmatpush1.bf16.xpose.msra.mxu0 %v1466_v48 }
  0x71   : > { %1105 = vmatpush1.bf16.xpose.msra.mxu1 %v1466_v48  ;;  %693 = vmatprep.subr.bf16.mxu0 %v1467_v49 }
  0x72   : > { %1090 = vmatprep.subr.bf16.mxu1 %v1467_v49 }
  0x78   : > { %694 = vmatpush1.bf16.xpose.msra.mxu0 %v1469_v50 }
  0x79   : > { %1106 = vmatpush1.bf16.xpose.msra.mxu1 %v1469_v50  ;;  %695 = vmatprep.subr.bf16.mxu0 %v1470_v51 }
  0x7a   : > { %1091 = vmatprep.subr.bf16.mxu1 %v1470_v51 }
  0x80   : > { %696 = vmatpush1.bf16.xpose.msra.mxu0 %v1472_v52 }
  0x81   : > { %1107 = vmatpush1.bf16.xpose.msra.mxu1 %v1472_v52  ;;  %697 = vmatprep.subr.bf16.mxu0 %v1473_v54 }
  0x82   : > { %1092 = vmatprep.subr.bf16.mxu1 %v1473_v54 }
  0x88   : > { %698 = vmatpush1.bf16.xpose.msra.mxu0 %v1475_v56 }
  0x89   : > { %1108 = vmatpush1.bf16.xpose.msra.mxu1 %v1475_v56  ;;  %699 = vmatprep.subr.bf16.mxu0 %v1476_v57 }
  0x8a   : > { %1093 = vmatprep.subr.bf16.mxu1 %v1476_v57 }
  0x90   : > { %700 = vmatpush2.bf16.xpose.msra.mxu0 %v1478_v58 }
  0x91   : > { %1109 = vmatpush2.bf16.xpose.msra.mxu1 %v1478_v58  ;;  %701 = vmatprep.subr.bf16.mxu0 %v1479_v59 }
  0x92   : > { %1094 = vmatprep.subr.bf16.mxu1 %v1479_v59 }
  0x98   : > { %702 = vmatpush2.bf16.xpose.msra.mxu0 %v1481_v60 }
  0x99   : > { %1110 = vmatpush2.bf16.xpose.msra.mxu1 %v1481_v60  ;;  %703 = vmatprep.subr.bf16.mxu0 %v1482_v62 }
  0x9a   : > { %1095 = vmatprep.subr.bf16.mxu1 %v1482_v62 }
  0xa0   : > { %704 = vmatpush2.bf16.xpose.msra.mxu0 %v1484_v4 }
  0xa1   : > { %1111 = vmatpush2.bf16.xpose.msra.mxu1 %v1484_v4  ;;  %705 = vmatprep.subr.bf16.mxu0 %v1485_v7 }
  0xa2   : > { %1096 = vmatprep.subr.bf16.mxu1 %v1485_v7 }
  0xa8   : > { %706 = vmatpush2.bf16.xpose.msra.mxu0 %v1487_v8 }
  0xa9   : > { %1112 = vmatpush2.bf16.xpose.msra.mxu1 %v1487_v8  ;;  %707 = vmatprep.subr.bf16.mxu0 %v1488_v12 }
  0xaa   : > { %1097 = vmatprep.subr.bf16.mxu1 %v1488_v12 }
  0xb0   : > { %708 = vmatpush2.bf16.xpose.msra.mxu0 %v1490_v13 }
  0xb1   : > { %1113 = vmatpush2.bf16.xpose.msra.mxu1 %v1490_v13  ;;  %709 = vmatprep.subr.bf16.mxu0 %v1491_v16 }
  0xb2   : > { %1098 = vmatprep.subr.bf16.mxu1 %v1491_v16 }
  0xb8   : > { %710 = vmatpush2.bf16.xpose.msra.mxu0 %v1493_v22 }
  0xb9   : > { %1114 = vmatpush2.bf16.xpose.msra.mxu1 %v1493_v22  ;;  %711 = vmatprep.subr.bf16.mxu0 %v1494_v23 }
  0xba   : > { %1099 = vmatprep.subr.bf16.mxu1 %v1494_v23 }
  0xc0   : > { %712 = vmatpush2.bf16.xpose.msra.mxu0 %v1496_v25 }
  0xc1   : > { %1115 = vmatpush2.bf16.xpose.msra.mxu1 %v1496_v25  ;;  %713 = vmatprep.subr.bf16.mxu0 %v1497_v26 }
  0xc2   : > { %1100 = vmatprep.subr.bf16.mxu1 %v1497_v26 }
  0xc8   : > { %714 = vmatpush2.bf16.xpose.msra.mxu0 %v1499_v27 }
  0xc9   : > { %1116 = vmatpush2.bf16.xpose.msra.mxu1 %v1499_v27 }
  0xcf   : > { %v341_v32 = vpop.xlane.xlu1 %340 }
  0xd0   : > { %v371_v33 = vmax.f32 %v341_v32, 1e-05  ;;  %v317_v34 = vpop.xlane.xlu0 %316 }
  0xd1   : > { %v363_v35 = vmax.f32 %v317_v34, 1e-05 }
  0xd2   : > { %v1960_v36 = vmul.f32 0.007874016, %v371_v33 }
  0xd3   : > { %v1962_v37 = vmul.f32 0.007874016, %v363_v35  ;;  %v344_v44 = vpop.xlane.xlu1 %343 }
  0xd4   : > { %1500 = vrcp.f32 %v1960_v36  ;;  %v372_v45 = vmax.f32 %v344_v44, 1e-05  ;;  %v320_v46 = vpop.xlane.xlu0 %319 }
  0xd5   : > { %1502 = vrcp.f32 %v1962_v37  ;;  %v364_v48 = vmax.f32 %v320_v46, 1e-05 }
  0xd6   : > { %v1966_v49 = vmul.f32 0.007874016, %v372_v45 }
  0xd7   : > { %v1968_v50 = vmul.f32 0.007874016, %v364_v48  ;;  %v326_v51 = vpop.xlane.xlu1 %325 }
  0xd8   : > { %1504 = vrcp.f32 %v1966_v49  ;;  %v366_v52 = vmax.f32 %v326_v51, 1e-05  ;;  %v323_v54 = vpop.xlane.xlu0 %322 }
  0xd9   : > { %1506 = vrcp.f32 %v1968_v50  ;;  %v365_v56 = vmax.f32 %v323_v54, 1e-05 }
  0xda   : > { %v1972_v58 = vmul.f32 0.007874016, %v366_v52 }
  0xdb   : > { %v350_v57 = vpop.xlane.xlu1 %349  ;;  %v1974_v62 = vmul.f32 0.007874016, %v365_v56 }
  0xdc   : > { %2453 = vst [vmem:[#allocation11_spill] sm:$0xff] %v1972_v58  ;;  %v374_v59 = vmax.f32 %v350_v57, 1e-05  ;;  %v347_v60 = vpop.xlane.xlu0 %346  ;;  %1508 = vrcp.f32 %v1972_v58 }
  0xdd   : > { %2454 = vst [vmem:[#allocation12_spill] sm:$0xff] %v1974_v62  ;;  %v373_v4 = vmax.f32 %v347_v60, 1e-05  ;;  %1510 = vrcp.f32 %v1974_v62 }
  0xde   : > { %v1976_v7 = vmul.f32 0.007874016, %v374_v59 }
  0xdf   : > { %v1978_v8 = vmul.f32 0.007874016, %v373_v4  ;;  %v332_v12 = vpop.xlane.xlu1 %331 }
  0xe0   : > { %2455 = vst [vmem:[#allocation13_spill] sm:$0xff] %v1976_v7  ;;  %v368_v13 = vmax.f32 %v332_v12, 1e-05  ;;  %v329_v16 = vpop.xlane.xlu0 %328  ;;  %1512 = vrcp.f32 %v1976_v7 }
  0xe1   : > { %2456 = vst [vmem:[#allocation14_spill] sm:$0xff] %v1978_v8  ;;  %v1501_v22 = vpop.eup %1500  ;;  %v367_v23 = vmax.f32 %v329_v16, 1e-05  ;;  %1514 = vrcp.f32 %v1978_v8 }
  0xe2   : > { %v1503_v25 = vpop.eup %1502  ;;  %v1983_v26 = vmul.f32 0.007874016, %v368_v13  ;;  %v1986_v27 = vmul.f32 %v1501_v22, %v1836_v1  ;;  %v1995_v46 = vmul.f32 %v1501_v22, %v1833_v0 }
  0xe3   : > { %v356_v32 = vpop.xlane.xlu1 %355  ;;  %v1990_v33 = vmul.f32 %v1503_v25, %v1844_v5  ;;  %v1999_v51 = vmul.f32 0.007874016, %v367_v23  ;;  %v2008_v59 = vmul.f32 %v1503_v25, %v1839_v2 }
  0xe4   : > { %2457 = vst [vmem:[#allocation15_spill] sm:$0xff] %v1983_v26  ;;  %v376_v34 = vmax.f32 %v356_v32, 1e-05  ;;  %v353_v35 = vpop.xlane.xlu0 %352  ;;  %v1253_v44 = vand.u32 2147483647, %v1986_v27  ;;  %v1255_v45 = vcvt.f32.s32 %v1986_v27  ;;  %1516 = vrcp.f32 %v1983_v26 }
  0xe5   : > { %v1997_v48 = vpop.eup %1504  ;;  %2458 = vst [vmem:[#allocation16_spill] sm:$0xff] %v1999_v51  ;;  %v375_v1 = vmax.f32 %v353_v35, 1e-05  ;;  %v1125_v52 = vand.u32 2147483647, %v1990_v33  ;;  %v1127_v54 = vcvt.f32.s32 %v1990_v33  ;;  %v1130_v57 = vand.u32 2147483648, %v1990_v33 }
  0xe6   : > { %v1507_v5 = vpop.eup %1506  ;;  %v2004_v56 = vmul.f32 0.007874016, %v376_v34  ;;  %v2013_v12 = vmul.f32 %v1997_v48, %v1852_v9  ;;  %vm2015_vm0 = vcmp.lt.f32.partialorder %v1253_v44, 8388608.0  ;;  %v1256_v2 = vcvt.s32.f32 %v1255_v45 }
  0xe7   : > { %v338_v0 = vpop.xlane.xlu1 %337  ;;  %v414_v60 = vmul.f32 %v1507_v5, %v1860_v14  ;;  %v1128_v4 = vcvt.s32.f32 %v1127_v54  ;;  %v2019_v16 = vmul.f32 0.007874016, %v375_v1  ;;  %vm2021_vm1 = vcmp.lt.f32.partialorder %v1125_v52, 8388608.0 }
  0xe8   : > { %2459 = vst [vmem:[#allocation17_spill] sm:$0xff] %v2004_v56  ;;  %v370_v22 = vmax.f32 %v338_v0, 1e-05  ;;  %v335_v23 = vpop.xlane.xlu0 %334  ;;  %1518 = vrcp.f32 %v1999_v51  ;;  %v1257_v44 = vand.u32 2147483647, %v1256_v2  ;;  %v1258_v54 = vand.u32 2147483648, %v1986_v27 }
  0xe9   : > { %2462 = vst [vmem:[#allocation18_spill] sm:$0xff] %v2019_v16  ;;  %v369_v14 = vmax.f32 %v335_v23, 1e-05  ;;  %v1129_v25 = vand.u32 2147483647, %v1128_v4  ;;  %v1143_v35 = vcvt.f32.s32 %v414_v60  ;;  %1520 = vrcp.f32 %v2004_v56 }
  0xea   : > { %v1141_v34 = vand.u32 2147483647, %v414_v60  ;;  %v2026_v9 = vmul.f32 0.007874016, %v370_v22  ;;  %v1269_v26 = vand.u32 2147483647, %v2013_v12  ;;  %1522 = vrcp.f32 %v2019_v16  ;;  %v2034_v22 = vpop.eup %1508 }
  0xeb   : > { %v2030_v1 = vmul.f32 0.007874016, %v369_v14  ;;  %v362_v52 = vpop.xlane.xlu1 %361  ;;  %v1131_v0 = vor.u32 %v1130_v57, %v1129_v25  ;;  %v1144_v4 = vcvt.s32.f32 %v1143_v35  ;;  %v1259_v51 = vor.u32 %v1258_v54, %v1257_v44  ;;  %v2041_v56 = vpop.eup %1510 }
  0xec   : > { %2465 = vst [vmem:[#allocation19_spill] sm:$0xff] %v2026_v9  ;;  %v378_v45 = vmax.f32 %v362_v52, 1e-05  ;;  %v359_v23 = vpop.xlane.xlu0 %358  ;;  %1524 = vrcp.f32 %v2026_v9  ;;  %vm2037_vm2 = vcmp.lt.f32.partialorder %v1141_v34, 8388608.0  ;;  %v1146_v14 = vand.u32 2147483648, %v414_v60 }
  0xed   : > { %2466 = vst [vmem:[#allocation20_spill] sm:$0xff] %v2030_v1  ;;  %v377_v2 = vmax.f32 %v359_v23, 1e-05  ;;  %1526 = vrcp.f32 %v2030_v1  ;;  %v1145_v25 = vand.u32 2147483647, %v1144_v4  ;;  %v1271_v35 = vcvt.f32.s32 %v2013_v12  ;;  %v2047_v44 = vpop.eup %1512 }
  0xee   : > { %v2044_v57 = vmul.f32 0.007874016, %v378_v45  ;;  %v1132_v54 = vsel %vm2021_vm1, %v1131_v0, %v1990_v33  ;;  %vm2052_vm3 = vcmp.lt.f32.partialorder %v1269_v26, 8388608.0  ;;  %v413_v52 = vmul.f32 %v1507_v5, %v1855_v10  ;;  %v2058_v9 = vpop.eup %1514 }
  0xef   : > { %v1117_v23 = vand.u32 2147483647, %v2008_v59  ;;  %v1147_v45 = vor.u32 %v1146_v14, %v1145_v25  ;;  %v1260_v4 = vsel %vm2015_vm0, %v1259_v51, %v1986_v27  ;;  %v1272_v1 = vcvt.s32.f32 %v1271_v35 }
  0xf0   : > { %2469 = vst [vmem:[#allocation21_spill] sm:$0xff] %v2044_v57  ;;  %v1119_v16 = vcvt.f32.s32 %v2008_v59  ;;  %1528 = vrcp.f32 %v2044_v57  ;;  %v2065_v26 = vmul.f32 0.007874016, %v377_v2  ;;  %v1274_v33 = vand.u32 2147483648, %v2013_v12 }
  0xf1   : > { %v1133_v32 = vand.u32 2147483647, %v413_v52  ;;  %v1148_v10 = vsel %vm2037_vm2, %v1147_v45, %v414_v60  ;;  %v1273_v5 = vand.u32 2147483647, %v1272_v1  ;;  %v1135_v14 = vcvt.f32.s32 %v413_v52  ;;  %v2070_v25 = vpop.eup %1516 }
  0xf2   : > { %v1120_v0 = vcvt.s32.f32 %v1119_v16  ;;  %v476_v13 = vpack.c.bf16 %v1148_v10, %v1132_v54  ;;  %vm2072_vm4 = vcmp.lt.f32.partialorder %v1117_v23, 8388608.0  ;;  %v1122_v51 = vand.u32 2147483648, %v2008_v59 }
  0xf3   : > { %v429_v2 = vmul.f32 %v1997_v48, %v1847_v6  ;;  %v1275_v35 = vor.u32 %v1274_v33, %v1273_v5  ;;  %v1136_v8 = vcvt.s32.f32 %v1135_v14  ;;  %v1245_v7 = vand.u32 2147483647, %v1995_v46 }
  0xf4   : > { %v1121_v57 = vand.u32 2147483647, %v1120_v0  ;;  %715 = vmatprep.mubr.bf16.mxu0 %v476_v13  ;;  %vm2080_vm5 = vcmp.lt.f32.partialorder %v1133_v32, 8388608.0  ;;  %v1138_v16 = vand.u32 2147483648, %v413_v52  ;;  %v1247_v1 = vcvt.f32.s32 %v1995_v46 }
  0xf5   : > { %v1263_v54 = vcvt.f32.s32 %v429_v2  ;;  %v2085_v23 = vpop.eup %1518  ;;  %v1276_v6 = vsel %vm2052_vm3, %v1275_v35, %v2013_v12  ;;  %v1137_v45 = vand.u32 2147483647, %v1136_v8  ;;  %v1250_v33 = vand.u32 2147483648, %v1995_v46 }
  0xf6   : > { %v1123_v48 = vor.u32 %v1122_v51, %v1121_v57  ;;  %v484_v10 = vpack.c.bf16 %v1276_v6, %v1260_v4  ;;  %v1248_v5 = vcvt.s32.f32 %v1247_v1  ;;  %v1261_v32 = vand.u32 2147483647, %v429_v2  ;;  %v2091_v14 = vpop.eup %1520 }
  0xf7   : > { %v1264_v0 = vcvt.s32.f32 %v1263_v54  ;;  %v1139_v58 = vor.u32 %v1138_v16, %v1137_v45  ;;  %vm2096_vm6 = vcmp.lt.f32.partialorder %v1245_v7, 8388608.0  ;;  %v416_v8 = vmul.f32 %v2041_v56, %v1876_v24  ;;  %v2102_v12 = vpop.eup %1522 }
  0xf8   : > { %v1124_v13 = vsel %vm2072_vm4, %v1123_v48, %v2008_v59  ;;  %755 = vmatprep.mubr.bf16.mxu1 %v484_v10  ;;  %v1249_v57 = vand.u32 2147483647, %v1248_v5  ;;  %v1266_v4 = vand.u32 2147483648, %v429_v2  ;;  %v418_v51 = vmul.f32 %v2034_v22, %v1868_v19 }
  0xf9   : > { %v1265_v34 = vand.u32 2147483647, %v1264_v0  ;;  %v2106_v35 = vpop.eup %1524  ;;  %v1140_v59 = vsel %vm2080_vm5, %v1139_v58, %v413_v52  ;;  %v1157_v27 = vand.u32 2147483647, %v416_v8  ;;  %v1159_v7 = vcvt.f32.s32 %v416_v8 }
  0xfa   : > { %v432_v16 = vmul.f32 %v2058_v9, %v1890_v31  ;;  %v2112_v24 = vpop.eup %1526  ;;  %v475_v1 = vpack.c.bf16 %v1140_v59, %v1124_v13  ;;  %v1251_v54 = vor.u32 %v1250_v33, %v1249_v57  ;;  %v1173_v48 = vand.u32 2147483647, %v418_v51 }
  0xfb   : > { %v1267_v6 = vor.u32 %v1266_v4, %v1265_v34  ;;  %vm1262_vm7 = vcmp.lt.f32.partialorder %v1261_v32, 8388608.0  ;;  %v1160_v45 = vcvt.s32.f32 %v1159_v7  ;;  %v1162_v10 = vand.u32 2147483648, %v416_v8 }
  0xfc   : > { %v1175_v19 = vcvt.f32.s32 %v418_v51  ;;  %716 = vmatmul.mubr.bf16.vlgmr.msra.gmra.mxu0 %v475_v1  ;;  %v1252_v58 = vsel %vm2096_vm6, %v1251_v54, %v1995_v46  ;;  %vm2117_vm8 = vcmp.lt.f32.partialorder %v1157_v27, 8388608.0  ;;  %v434_v31 = vmul.f32 %v2047_v44, %v1884_v29 }
  0xfd   : > { %v1268_v52 = vsel %vm1262_vm7, %v1267_v6, %v429_v2  ;;  %v2123_v33 = vpop.eup %1528  ;;  %v1161_v32 = vand.u32 2147483647, %v1160_v45  ;;  %v1285_v13 = vand.u32 2147483647, %v432_v16  ;;  %vm2125_vm9 = vcmp.lt.f32.partialorder %v1173_v48, 8388608.0 }
  0xfe   : > { %v483_v5 = vpack.c.bf16 %v1268_v52, %v1252_v58  ;;  %v1176_v0 = vcvt.s32.f32 %v1175_v19  ;;  %v1178_v62 = vand.u32 2147483648, %v418_v51  ;;  %v1287_v46 = vcvt.f32.s32 %v432_v16 }
  0xff   : > { %v1303_v2 = vcvt.f32.s32 %v434_v31  ;;  %v1163_v34 = vor.u32 %v1162_v10, %v1161_v32  ;;  %v1290_v59 = vand.u32 2147483648, %v432_v16  ;;  %v1301_v27 = vand.u32 2147483647, %v434_v31 }
 0x100   : > { %756 = vmatmul.mubr.bf16.vlgmr.msra.gmra.mxu1 %v483_v5  ;;  %v1177_v4 = vand.u32 2147483647, %v1176_v0  ;;  %vm2129_vm10 = vcmp.lt.f32.partialorder %v1285_v13, 8388608.0  ;;  %v1288_v7 = vcvt.s32.f32 %v1287_v46  ;;  %v415_v54 = vmul.f32 %v2041_v56, %v1871_v20 }
 0x101   : > { %v1304_v1 = vcvt.s32.f32 %v1303_v2  ;;  %v1164_v6 = vsel %vm2117_vm8, %v1163_v34, %v416_v8  ;;  %v1306_v45 = vand.u32 2147483648, %v434_v31  ;;  %v417_v10 = vmul.f32 %v2034_v22, %v1863_v15 }
 0x102   : > { %v1179_v48 = vor.u32 %v1178_v62, %v1177_v4  ;;  %v1289_v19 = vand.u32 2147483647, %v1288_v7  ;;  %v1149_v52 = vand.u32 2147483647, %v415_v54  ;;  %v1151_v5 = vcvt.f32.s32 %v415_v54 }
 0x103   : > { %v1305_v58 = vand.u32 2147483647, %v1304_v1  ;;  %vm2141_vm11 = vcmp.lt.f32.partialorder %v1301_v27, 8388608.0  ;;  %v1167_v20 = vcvt.f32.s32 %v417_v10  ;;  %v431_v56 = vmul.f32 %v2058_v9, %v1887_v30 }
 0x104   : > { %v1180_v32 = vsel %vm2125_vm9, %v1179_v48, %v418_v51  ;;  %v1291_v60 = vor.u32 %v1290_v59, %v1289_v19  ;;  %v1165_v62 = vand.u32 2147483647, %v417_v10  ;;  %vm2147_vm12 = vcmp.lt.f32.partialorder %v1149_v52, 8388608.0 }
 0x105   : > { %v478_v8 = vpack.c.bf16 %v1180_v32, %v1164_v6  ;;  %v1307_v13 = vor.u32 %v1306_v45, %v1305_v58  ;;  %v1152_v22 = vcvt.s32.f32 %v1151_v5  ;;  %v1154_v46 = vand.u32 2147483648, %v415_v54 }
 0x106   : > { %v1168_v57 = vcvt.s32.f32 %v1167_v20  ;;  %v1292_v51 = vsel %vm2129_vm10, %v1291_v60, %v432_v16  ;;  %v1170_v34 = vand.u32 2147483648, %v417_v10  ;;  %v433_v30 = vmul.f32 %v2047_v44, %v1881_v28 }
 0x107   : > { %725 = vmatprep.mubr.bf16.mxu0 %v478_v8  ;;  %v1308_v2 = vsel %vm2141_vm11, %v1307_v13, %v434_v31  ;;  %v1153_v4 = vand.u32 2147483647, %v1152_v22  ;;  %v1279_v27 = vcvt.f32.s32 %v431_v56  ;;  %vm2157_vm13 = vcmp.lt.f32.partialorder %v1165_v62, 8388608.0 }
 0x108   : > { %v486_v9 = vpack.c.bf16 %v1308_v2, %v1292_v51  ;;  %v1169_v59 = vand.u32 2147483647, %v1168_v57  ;;  %v1277_v1 = vand.u32 2147483647, %v431_v56  ;;  %v1282_v6 = vand.u32 2147483648, %v431_v56 }
 0x109   : > { %v1295_v48 = vcvt.f32.s32 %v433_v30  ;;  %v1155_v16 = vor.u32 %v1154_v46, %v1153_v4  ;;  %v1280_v45 = vcvt.s32.f32 %v1279_v27  ;;  %v1293_v31 = vand.u32 2147483647, %v433_v30 }
 0x10a   : > { %765 = vmatprep.mubr.bf16.mxu1 %v486_v9  ;;  %v1171_v29 = vor.u32 %v1170_v34, %v1169_v59  ;;  %v1298_v58 = vand.u32 2147483648, %v433_v30  ;;  %v420_v28 = vmul.f32 %v2085_v23, %v1906_v41  ;;  %v422_v44 = vmul.f32 %v2070_v25, %v1900_v39 }
 0x10b   : > { %v1296_v19 = vcvt.s32.f32 %v1295_v48  ;;  %v1156_v52 = vsel %vm2147_vm12, %v1155_v16, %v415_v54  ;;  %v1281_v32 = vand.u32 2147483647, %v1280_v45  ;;  %v2171_v0 = vmul.f32 %v2102_v12, %v1924_v53 }
 0x10c   : > { %v1172_v5 = vsel %vm2157_vm13, %v1171_v29, %v417_v10  ;;  %v1189_v60 = vand.u32 2147483647, %v420_v28  ;;  %v1191_v13 = vcvt.f32.s32 %v420_v28  ;;  %1530 = vrcp.f32 %v2065_v26 }
 0x10d   : > { %v477_v20 = vpack.c.bf16 %v1172_v5, %v1156_v52  ;;  %v1297_v8 = vand.u32 2147483647, %v1296_v19  ;;  %vm2174_vm14 = vcmp.lt.f32.partialorder %v1277_v1, 8388608.0  ;;  %v1283_v39 = vor.u32 %v1282_v6, %v1281_v32 }
 0x10e   : > { %v1207_v54 = vcvt.f32.s32 %v422_v44  ;;  %vm1294_vm15 = vcmp.lt.f32.partialorder %v1293_v31, 8388608.0  ;;  %v1192_v62 = vcvt.s32.f32 %v1191_v13  ;;  %v1205_v15 = vand.u32 2147483647, %v422_v44 }
 0x10f   : > { %726 = vmatmul.mubr.bf16.gmra.mxu0 %v477_v20  ;;  %v1299_v10 = vor.u32 %v1298_v58, %v1297_v8  ;;  %v1284_v53 = vsel %vm2174_vm14, %v1283_v39, %v431_v56  ;;  %v1194_v22 = vand.u32 2147483648, %v420_v28  ;;  %v438_v57 = vmul.f32 %v2091_v14, %v1912_v43 }
 0x110   : > { %v1208_v46 = vcvt.s32.f32 %v1207_v54  ;;  %vm2182_vm0 = vcmp.lt.f32.partialorder %v1189_v60, 8388608.0  ;;  %v1193_v34 = vand.u32 2147483647, %v1192_v62  ;;  %v1319_v9 = vcvt.f32.s32 %v2171_v0 }
 0x111   : > { %v1300_v51 = vsel %vm1294_vm15, %v1299_v10, %v433_v30  ;;  %v1210_v27 = vand.u32 2147483648, %v422_v44  ;;  %v1317_v7 = vand.u32 2147483647, %v2171_v0  ;;  %vm1206_vm1 = vcmp.lt.f32.partialorder %v1205_v15, 8388608.0 }
 0x112   : > { %v485_v4 = vpack.c.bf16 %v1300_v51, %v1284_v53  ;;  %v1209_v59 = vand.u32 2147483647, %v1208_v46  ;;  %v1195_v1 = vor.u32 %v1194_v22, %v1193_v34  ;;  %v1320_v56 = vcvt.s32.f32 %v1319_v9 }
 0x113   : > { %v1335_v6 = vcvt.f32.s32 %v438_v57  ;;  %v1322_v43 = vand.u32 2147483648, %v2171_v0  ;;  %v1333_v30 = vand.u32 2147483647, %v438_v57  ;;  %v419_v16 = vmul.f32 %v2085_v23, %v1903_v40 }
 0x114   : > { %766 = vmatmul.mubr.bf16.gmra.mxu1 %v485_v4  ;;  %v1211_v48 = vor.u32 %v1210_v27, %v1209_v59  ;;  %v1196_v29 = vsel %vm2182_vm0, %v1195_v1, %v420_v28  ;;  %v1321_v45 = vand.u32 2147483647, %v1320_v56  ;;  %v421_v19 = vmul.f32 %v2070_v25, %v1897_v38 }
 0x115   : > { %v1336_v31 = vcvt.s32.f32 %v1335_v6  ;;  %vm2195_vm2 = vcmp.lt.f32.partialorder %v1317_v7, 8388608.0  ;;  %v1183_v5 = vcvt.f32.s32 %v419_v16  ;;  %v1338_v60 = vand.u32 2147483648, %v438_v57 }
 0x116   : > { %v1212_v58 = vsel %vm1206_vm1, %v1211_v48, %v422_v44  ;;  %v1323_v20 = vor.u32 %v1322_v43, %v1321_v45  ;;  %vm2199_vm3 = vcmp.lt.f32.partialorder %v1333_v30, 8388608.0  ;;  %v1181_v23 = vand.u32 2147483647, %v419_v16 }
 0x117   : > { %v480_v32 = vpack.c.bf16 %v1212_v58, %v1196_v29  ;;  %v1337_v8 = vand.u32 2147483647, %v1336_v31  ;;  %v1184_v28 = vcvt.s32.f32 %v1183_v5  ;;  %v1199_v13 = vcvt.f32.s32 %v421_v19 }
 0x118   : > { %v1324_v38 = vsel %vm2195_vm2, %v1323_v20, %v2171_v0  ;;  %v1186_v44 = vand.u32 2147483648, %v419_v16  ;;  %v435_v41 = vmul.f32 %v2102_v12, %v1917_v47  ;;  %v1197_v54 = vand.u32 2147483647, %v421_v19 }
 0x119   : > { %735 = vmatprep.mubr.bf16.mxu0 %v480_v32  ;;  %v1339_v25 = vor.u32 %v1338_v60, %v1337_v8  ;;  %v1185_v39 = vand.u32 2147483647, %v1184_v28  ;;  %v1200_v10 = vcvt.s32.f32 %v1199_v13  ;;  %v437_v62 = vmul.f32 %v2091_v14, %v1909_v42  ;;  %v2210_v15 = vpop.eup %1530 }
 0x11a   : > { %v1202_v22 = vand.u32 2147483648, %v421_v19  ;;  %v1311_v46 = vcvt.f32.s32 %v435_v41  ;;  %v424_v0 = vmul.f32 %v2112_v24, %v1938_v3  ;;  %v1309_v47 = vand.u32 2147483647, %v435_v41 }
 0x11b   : > { %v1340_v53 = vsel %vm2199_vm3, %v1339_v25, %v438_v57  ;;  %v1187_v2 = vor.u32 %v1186_v44, %v1185_v39  ;;  %v1201_v34 = vand.u32 2147483647, %v1200_v10  ;;  %vm2216_vm4 = vcmp.lt.f32.partialorder %v1181_v23, 8388608.0 }
 0x11c   : > { %v488_v51 = vpack.c.bf16 %v1340_v53, %v1324_v38  ;;  %v1312_v9 = vcvt.s32.f32 %v1311_v46  ;;  %v1325_v42 = vand.u32 2147483647, %v437_v62  ;;  %v1327_v14 = vcvt.f32.s32 %v437_v62 }
 0x11d   : > { %v1188_v57 = vsel %vm2216_vm4, %v1187_v2, %v419_v16  ;;  %vm1198_vm5 = vcmp.lt.f32.partialorder %v1197_v54, 8388608.0  ;;  %v1203_v4 = vor.u32 %v1202_v22, %v1201_v34  ;;  %v426_v3 = vmul.f32 %v2106_v35, %v1932_v61 }
 0x11e   : > { %775 = vmatprep.mubr.bf16.mxu1 %v488_v51  ;;  %v1313_v59 = vand.u32 2147483647, %v1312_v9  ;;  %v1314_v27 = vand.u32 2147483648, %v435_v41  ;;  %v1328_v7 = vcvt.s32.f32 %v1327_v14  ;;  %v1223_v1 = vcvt.f32.s32 %v424_v0 }
 0x11f   : > { %v1204_v56 = vsel %vm1198_vm5, %v1203_v4, %v421_v19  ;;  %vm2224_vm6 = vcmp.lt.f32.partialorder %v1309_v47, 8388608.0  ;;  %v1330_v48 = vand.u32 2147483648, %v437_v62  ;;  %v1239_v43 = vcvt.f32.s32 %v426_v3 }
 0x120   : > { %v479_v30 = vpack.c.bf16 %v1204_v56, %v1188_v57  ;;  %v1315_v29 = vor.u32 %v1314_v27, %v1313_v59  ;;  %vm2228_vm7 = vcmp.lt.f32.partialorder %v1325_v42, 8388608.0  ;;  %v1329_v45 = vand.u32 2147483647, %v1328_v7 }
 0x121   : > { %v1221_v31 = vand.u32 2147483647, %v424_v0  ;;  %v1224_v61 = vcvt.s32.f32 %v1223_v1  ;;  %v1237_v58 = vand.u32 2147483647, %v426_v3  ;;  %v1240_v52 = vcvt.s32.f32 %v1239_v43 }
 0x122   : > { %736 = vmatmul.mubr.bf16.gmra.mxu0 %v479_v30  ;;  %v1316_v19 = vsel %vm2224_vm6, %v1315_v29, %v435_v41  ;;  %v1331_v5 = vor.u32 %v1330_v48, %v1329_v45  ;;  %v440_v32 = vmul.f32 %v2210_v15, %v1954_v21  ;;  %v442_v20 = vmul.f32 %v2123_v33, %v1948_v17 }
 0x123   : > { %v1225_v8 = vand.u32 2147483647, %v1224_v61  ;;  %v1226_v60 = vand.u32 2147483648, %v424_v0  ;;  %v1241_v40 = vand.u32 2147483647, %v1240_v52  ;;  %v1242_v23 = vand.u32 2147483648, %v426_v3 }
 0x124   : > { %v1332_v28 = vsel %vm2228_vm7, %v1331_v5, %v437_v62  ;;  %v1351_v13 = vcvt.f32.s32 %v440_v32  ;;  %v423_v38 = vmul.f32 %v2112_v24, %v1935_v63  ;;  %v425_v25 = vmul.f32 %v2106_v35, %v1928_v55 }
 0x125   : > { %v487_v44 = vpack.c.bf16 %v1332_v28, %v1316_v19  ;;  %v1227_v41 = vor.u32 %v1226_v60, %v1225_v8  ;;  %v1243_v21 = vor.u32 %v1242_v23, %v1241_v40  ;;  %v1349_v39 = vand.u32 2147483647, %v440_v32 }
 0x126   : > { %vm1222_vm8 = vcmp.lt.f32.partialorder %v1221_v31, 8388608.0  ;;  %vm1238_vm9 = vcmp.lt.f32.partialorder %v1237_v58, 8388608.0  ;;  %v1352_v17 = vcvt.s32.f32 %v1351_v13  ;;  %v1367_v54 = vcvt.f32.s32 %v442_v20  ;;  %v828_v13 = vld [vmem:[%s2418_s2] sm:$0x3] }
 0x127   : > { %776 = vmatmul.mubr.bf16.gmra.mxu1 %v487_v44  ;;  %v1228_v10 = vsel %vm1222_vm8, %v1227_v41, %v424_v0  ;;  %v1244_v53 = vsel %vm1238_vm9, %v1243_v21, %v426_v3  ;;  %v1354_v22 = vand.u32 2147483648, %v440_v32  ;;  %v1215_v2 = vcvt.f32.s32 %v423_v38 }
 0x128   : > { %v482_v62 = vpack.c.bf16 %v1244_v53, %v1228_v10  ;;  %v1353_v46 = vand.u32 2147483647, %v1352_v17  ;;  %v1368_v51 = vcvt.s32.f32 %v1367_v54  ;;  %vm2244_vm10 = vcmp.lt.f32.partialorder %v1349_v39, 8388608.0 }
 0x129   : > { %v1365_v55 = vand.u32 2147483647, %v442_v20  ;;  %v1370_v35 = vand.u32 2147483648, %v442_v20  ;;  %v1231_v24 = vcvt.f32.s32 %v425_v25  ;;  %v1213_v12 = vand.u32 2147483647, %v423_v38 }
 0x12a   : > { %745 = vmatprep.mubr.bf16.mxu0 %v482_v62  ;;  %v1355_v34 = vor.u32 %v1354_v22, %v1353_v46  ;;  %v1369_v47 = vand.u32 2147483647, %v1368_v51  ;;  %v1216_v9 = vcvt.s32.f32 %v1215_v2  ;;  %v1218_v42 = vand.u32 2147483648, %v423_v38 }
 0x12b   : > { %v1232_v0 = vcvt.s32.f32 %v1231_v24  ;;  %v439_v14 = vmul.f32 %v2210_v15, %v1951_v18  ;;  %v441_v57 = vmul.f32 %v2123_v33, %v1943_v11  ;;  %v1229_v27 = vand.u32 2147483647, %v425_v25 }
 0x12c   : > { %v1356_v4 = vsel %vm2244_vm10, %v1355_v34, %v440_v32  ;;  %v1371_v3 = vor.u32 %v1370_v35, %v1369_v47  ;;  %v1217_v59 = vand.u32 2147483647, %v1216_v9  ;;  %vm1366_vm11 = vcmp.lt.f32.partialorder %v1365_v55, 8388608.0 }
 0x12d   : > { %v1233_v7 = vand.u32 2147483647, %v1232_v0  ;;  %v1234_v1 = vand.u32 2147483648, %v425_v25  ;;  %v1343_v56 = vcvt.f32.s32 %v439_v14  ;;  %v1359_v43 = vcvt.f32.s32 %v441_v57 }
 0x12e   : > { %v1372_v6 = vsel %vm1366_vm11, %v1371_v3, %v442_v20  ;;  %v1219_v48 = vor.u32 %v1218_v42, %v1217_v59  ;;  %vm1214_vm12 = vcmp.lt.f32.partialorder %v1213_v12, 8388608.0  ;;  %vm1230_vm13 = vcmp.lt.f32.partialorder %v1229_v27, 8388608.0 }
 0x12f   : > { %v490_v30 = vpack.c.bf16 %v1372_v6, %v1356_v4  ;;  %v1235_v29 = vor.u32 %v1234_v1, %v1233_v7  ;;  %v1344_v18 = vcvt.s32.f32 %v1343_v56  ;;  %v1341_v11 = vand.u32 2147483647, %v439_v14  ;;  %v2507_v1 = vld [vmem:[#allocation11_spill] sm:$0xff]  ;;  %v2508_v6 = vld [vmem:[#allocation14_spill] sm:$0xff] }
 0x130   : > { %v1220_v15 = vsel %vm1214_vm12, %v1219_v48, %v423_v38  ;;  %v1360_v33 = vcvt.s32.f32 %v1359_v43  ;;  %v1346_v31 = vand.u32 2147483648, %v439_v14  ;;  %v1357_v61 = vand.u32 2147483647, %v441_v57 }
 0x131   : > { %785 = vmatprep.mubr.bf16.mxu1 %v490_v30  ;;  %v1236_v16 = vsel %vm1230_vm13, %v1235_v29, %v425_v25  ;;  %v1345_v45 = vand.u32 2147483647, %v1344_v18  ;;  %v1362_v19 = vand.u32 2147483648, %v441_v57  ;;  %vm1342_vm14 = vcmp.lt.f32.partialorder %v1341_v11, 8388608.0 }
 0x132   : > { %v481_v58 = vpack.c.bf16 %v1236_v16, %v1220_v15  ;;  %v1361_v52 = vand.u32 2147483647, %v1360_v33  ;;  %vm1358_vm15 = vcmp.lt.f32.partialorder %v1357_v61, 8388608.0  ;;  %v830_v40 = vlaneseq }
 0x133   : > { %v1347_v5 = vor.u32 %v1346_v31, %v1345_v45  ;;  %v2509_v31 = vld [vmem:[#allocation13_spill] sm:$0xff] }
 0x134   : > { %746 = vmatmul.mubr.bf16.gmra.mxu0 %v481_v58  ;;  %v1363_v32 = vor.u32 %v1362_v19, %v1361_v52  ;;  %v831_v23 = vshrl.u32 %v830_v40, 7 }
 0x135   : > { %v1348_v20 = vsel %vm1342_vm14, %v1347_v5, %v439_v14  ;;  %v2506_v14 = vld [vmem:[#allocation12_spill] sm:$0xff] }
 0x136   : > { %v1364_v8 = vsel %vm1358_vm15, %v1363_v32, %v441_v57  ;;  %v832_v28 = vsub.s32 0, %v831_v23  ;;  %v836_v38 = vsub.s32 1, %v831_v23 }
 0x137   : > { %v489_v60 = vpack.c.bf16 %v1364_v8, %v1348_v20  ;;  %v2510_v20 = vld [vmem:[#allocation16_spill] sm:$0xff] }
 0x138   : > { %v2257_v25 = vrot.slane %v828_v13, %v832_v28  ;;  %v2260_v21 = vrot.slane %v828_v13, %v836_v38 }
 0x139   : > { %786 = vmatmul.mubr.bf16.gmra.mxu1 %v489_v60 }
 0x1bc   : > { %v717_v44 = vpop.f32.mrf.mxu0 }
 0x1bd   : > { %v796_v41 = vmul.f32 %v717_v44, %v1962_v37  ;;  %v2511_v44 = vld [vmem:[#allocation15_spill] sm:$0xff] }
 0x1be   : > { %v719_v39 = vpop.f32.mrf.mxu0 }
 0x1bf   : > { %v840_v17 = vadd.f32 %v2257_v25, %v796_v41  ;;  %v797_v10 = vmul.f32 %v719_v39, %v1962_v37  ;;  %v2512_v39 = vld [vmem:[#allocation18_spill] sm:$0xff] }
 0x1c0   : > { %v757_v54 = vpop.f32.mrf.mxu1  ;;  %v721_v22 = vpop.f32.mrf.mxu0 }
 0x1c1   : > { %v812_v53 = vmul.f32 %v757_v54, %v1960_v36  ;;  %872 = vst [vmem:[%s2267_s24] sm:$0xff] %v840_v17  ;;  %v841_v62 = vadd.f32 %v2260_v21, %v797_v10  ;;  %v798_v51 = vmul.f32 %v721_v22, %v1968_v50 }
 0x1c2   : > { %v759_v46 = vpop.f32.mrf.mxu1  ;;  %v723_v63 = vpop.f32.mrf.mxu0 }
 0x1c3   : > { %v856_v2 = vadd.f32 %v2257_v25, %v812_v53  ;;  %v813_v37 = vmul.f32 %v759_v46, %v1960_v36  ;;  %873 = vst [vmem:[%s2267_s24 + $0x8] sm:$0xff] %v841_v62  ;;  %v842_v55 = vadd.f32 %v2257_v25, %v798_v51  ;;  %v799_v24 = vmul.f32 %v723_v63, %v1968_v50  ;;  %v2513_v63 = vld [vmem:[#allocation17_spill] sm:$0xff] }
 0x1c4   : > { %v761_v35 = vpop.f32.mrf.mxu1 }
 0x1c5   : > { %888 = vst [vmem:[%s2267_s24 + $0x80] sm:$0xff] %v856_v2  ;;  %v857_v34 = vadd.f32 %v2260_v21, %v813_v37  ;;  %v814_v47 = vmul.f32 %v761_v35, %v1966_v49  ;;  %874 = vst [vmem:[%s2267_s24 + $0x10] sm:$0xff] %v842_v55  ;;  %v843_v12 = vadd.f32 %v2260_v21, %v799_v24 }
 0x1c6   : > { %v763_v9 = vpop.f32.mrf.mxu1 }
 0x1c7   : > { %889 = vst [vmem:[%s2267_s24 + $0x88] sm:$0xff] %v857_v34  ;;  %v858_v36 = vadd.f32 %v2257_v25, %v814_v47  ;;  %v815_v42 = vmul.f32 %v763_v9, %v1966_v49  ;;  %875 = vst [vmem:[%s2267_s24 + $0x18] sm:$0xff] %v843_v12  ;;  %v2514_v9 = vld [vmem:[#allocation20_spill] sm:$0xff] }
 0x1c9   : > { %890 = vst [vmem:[%s2267_s24 + $0x90] sm:$0xff] %v858_v36  ;;  %v859_v50 = vadd.f32 %v2260_v21, %v815_v42 }
 0x1cb   : > { %891 = vst [vmem:[%s2267_s24 + $0x98] sm:$0xff] %v859_v50 }
 0x1cf   : > { %v727_v0 = vpop.f32.mrf.mxu0 }
 0x1d0   : > { %v800_v57 = vmul.f32 %v727_v0, %v2506_v14 }
 0x1d1   : > { %v729_v4 = vpop.f32.mrf.mxu0 }
 0x1d2   : > { %v844_v3 = vadd.f32 %v2257_v25, %v800_v57  ;;  %v801_v59 = vmul.f32 %v729_v4, %v2506_v14 }
 0x1d3   : > { %v731_v27 = vpop.f32.mrf.mxu0 }
 0x1d4   : > { %876 = vst [vmem:[%s2267_s24 + $0x20] sm:$0xff] %v844_v3  ;;  %v767_v7 = vpop.f32.mrf.mxu1  ;;  %v845_v49 = vadd.f32 %v2260_v21, %v801_v59  ;;  %v802_v56 = vmul.f32 %v731_v27, %v2507_v1  ;;  %v2515_v3 = vld [vmem:[#allocation19_spill] sm:$0xff] }
 0x1d5   : > { %v816_v48 = vmul.f32 %v767_v7, %v2508_v6  ;;  %v733_v43 = vpop.f32.mrf.mxu0 }
 0x1d6   : > { %877 = vst [vmem:[%s2267_s24 + $0x28] sm:$0xff] %v845_v49  ;;  %v769_v30 = vpop.f32.mrf.mxu1  ;;  %v846_v29 = vadd.f32 %v2257_v25, %v802_v56  ;;  %v803_v18 = vmul.f32 %v733_v43, %v2507_v1 }
 0x1d7   : > { %v860_v15 = vadd.f32 %v2257_v25, %v816_v48  ;;  %v817_v11 = vmul.f32 %v769_v30, %v2508_v6 }
 0x1d8   : > { %878 = vst [vmem:[%s2267_s24 + $0x30] sm:$0xff] %v846_v29  ;;  %v771_v33 = vpop.f32.mrf.mxu1  ;;  %v847_v16 = vadd.f32 %v2260_v21, %v803_v18  ;;  %v2516_v18 = vld [vmem:[#allocation21_spill] sm:$0xff] }
 0x1d9   : > { %892 = vst [vmem:[%s2267_s24 + $0xa0] sm:$0xff] %v860_v15  ;;  %v861_v45 = vadd.f32 %v2260_v21, %v817_v11  ;;  %v818_v61 = vmul.f32 %v771_v33, %v2509_v31 }
 0x1da   : > { %879 = vst [vmem:[%s2267_s24 + $0x38] sm:$0xff] %v847_v16  ;;  %v773_v58 = vpop.f32.mrf.mxu1 }
 0x1db   : > { %893 = vst [vmem:[%s2267_s24 + $0xa8] sm:$0xff] %v861_v45  ;;  %v862_v52 = vadd.f32 %v2257_v25, %v818_v61  ;;  %v819_v19 = vmul.f32 %v773_v58, %v2509_v31 }
 0x1dd   : > { %894 = vst [vmem:[%s2267_s24 + $0xb0] sm:$0xff] %v862_v52  ;;  %v863_v5 = vadd.f32 %v2260_v21, %v819_v19 }
 0x1df   : > { %895 = vst [vmem:[%s2267_s24 + $0xb8] sm:$0xff] %v863_v5 }
 0x1e2   : > { %v737_v32 = vpop.f32.mrf.mxu0 }
 0x1e3   : > { %v804_v8 = vmul.f32 %v737_v32, %v2510_v20 }
 0x1e4   : > { %v739_v60 = vpop.f32.mrf.mxu0 }
 0x1e5   : > { %v848_v40 = vadd.f32 %v2257_v25, %v804_v8  ;;  %v805_v23 = vmul.f32 %v739_v60, %v2510_v20 }
 0x1e6   : > { %v741_v28 = vpop.f32.mrf.mxu0 }
 0x1e7   : > { %880 = vst [vmem:[%s2267_s24 + $0x40] sm:$0xff] %v848_v40  ;;  %v777_v13 = vpop.f32.mrf.mxu1  ;;  %v849_v38 = vadd.f32 %v2260_v21, %v805_v23  ;;  %v806_v41 = vmul.f32 %v741_v28, %v2511_v44 }
 0x1e8   : > { %v820_v17 = vmul.f32 %v777_v13, %v2512_v39  ;;  %v743_v54 = vpop.f32.mrf.mxu0 }
 0x1e9   : > { %881 = vst [vmem:[%s2267_s24 + $0x48] sm:$0xff] %v849_v38  ;;  %v779_v10 = vpop.f32.mrf.mxu1  ;;  %v850_v53 = vadd.f32 %v2257_v25, %v806_v41  ;;  %v807_v22 = vmul.f32 %v743_v54, %v2511_v44 }
 0x1ea   : > { %v864_v62 = vadd.f32 %v2257_v25, %v820_v17  ;;  %v821_v46 = vmul.f32 %v779_v10, %v2512_v39 }
 0x1eb   : > { %882 = vst [vmem:[%s2267_s24 + $0x50] sm:$0xff] %v850_v53  ;;  %v781_v51 = vpop.f32.mrf.mxu1  ;;  %v851_v2 = vadd.f32 %v2260_v21, %v807_v22 }
 0x1ec   : > { %896 = vst [vmem:[%s2267_s24 + $0xc0] sm:$0xff] %v864_v62  ;;  %v865_v37 = vadd.f32 %v2260_v21, %v821_v46  ;;  %v822_v55 = vmul.f32 %v781_v51, %v2513_v63 }
 0x1ed   : > { %883 = vst [vmem:[%s2267_s24 + $0x58] sm:$0xff] %v851_v2  ;;  %v783_v35 = vpop.f32.mrf.mxu1 }
 0x1ee   : > { %897 = vst [vmem:[%s2267_s24 + $0xc8] sm:$0xff] %v865_v37  ;;  %v866_v24 = vadd.f32 %v2257_v25, %v822_v55  ;;  %v823_v34 = vmul.f32 %v783_v35, %v2513_v63 }
 0x1f0   : > { %898 = vst [vmem:[%s2267_s24 + $0xd0] sm:$0xff] %v866_v24  ;;  %v867_v47 = vadd.f32 %v2260_v21, %v823_v34 }
 0x1f2   : > { %899 = vst [vmem:[%s2267_s24 + $0xd8] sm:$0xff] %v867_v47 }
 0x1f4   : > { %v747_v12 = vpop.f32.mrf.mxu0 }
 0x1f5   : > { %v808_v36 = vmul.f32 %v747_v12, %v2514_v9 }
 0x1f6   : > { %v749_v42 = vpop.f32.mrf.mxu0 }
 0x1f7   : > { %v852_v50 = vadd.f32 %v2257_v25, %v808_v36  ;;  %v809_v0 = vmul.f32 %v749_v42, %v2514_v9 }
 0x1f8   : > { %v751_v14 = vpop.f32.mrf.mxu0 }
 0x1f9   : > { %884 = vst [vmem:[%s2267_s24 + $0x60] sm:$0xff] %v852_v50  ;;  %v787_v57 = vpop.f32.mrf.mxu1  ;;  %v853_v4 = vadd.f32 %v2260_v21, %v809_v0  ;;  %v810_v59 = vmul.f32 %v751_v14, %v2515_v3 }
 0x1fa   : > { %v824_v27 = vmul.f32 %v787_v57, %v2065_v26  ;;  %v753_v7 = vpop.f32.mrf.mxu0 }
 0x1fb   : > { %885 = vst [vmem:[%s2267_s24 + $0x68] sm:$0xff] %v853_v4  ;;  %v789_v49 = vpop.f32.mrf.mxu1  ;;  %v854_v1 = vadd.f32 %v2257_v25, %v810_v59  ;;  %v811_v56 = vmul.f32 %v753_v7, %v2515_v3 }
 0x1fc   : > { %v868_v6 = vadd.f32 %v2257_v25, %v824_v27  ;;  %v825_v48 = vmul.f32 %v789_v49, %v2065_v26 }
 0x1fd   : > { %886 = vst [vmem:[%s2267_s24 + $0x70] sm:$0xff] %v854_v1  ;;  %v791_v43 = vpop.f32.mrf.mxu1  ;;  %v855_v30 = vadd.f32 %v2260_v21, %v811_v56 }
 0x1fe   : > { %900 = vst [vmem:[%s2267_s24 + $0xe0] sm:$0xff] %v868_v6  ;;  %v869_v29 = vadd.f32 %v2260_v21, %v825_v48  ;;  %v826_v15 = vmul.f32 %v791_v43, %v2516_v18 }
 0x1ff   : > { %887 = vst [vmem:[%s2267_s24 + $0x78] sm:$0xff] %v855_v30  ;;  %v793_v11 = vpop.f32.mrf.mxu1 }
 0x200   : > { %901 = vst [vmem:[%s2267_s24 + $0xe8] sm:$0xff] %v869_v29  ;;  %v870_v26 = vadd.f32 %v2257_v25, %v826_v15  ;;  %v827_v33 = vmul.f32 %v793_v11, %v2516_v18 }
 0x202   : > { %902 = vst [vmem:[%s2267_s24 + $0xf0] sm:$0xff] %v870_v26  ;;  %v871_v16 = vadd.f32 %v2260_v21, %v827_v33 }
 0x204   : > { %903 = vst [vmem:[%s2267_s24 + $0xf8] sm:$0xff] %v871_v16 }
 0x205   : > { %1599 = shalt.err (!%p1596_p5)
}
 0x206   : > { %s1600_s18 = scalar_lea.hbm %s2363_s6, 4096  ;;  %s1604_s30 = scalar_lea.hbm %s2419_s3, 8192 }
 0x207   : > { %p1601_p7 = scmp.ne.s32.totalorder %s2363_s6, %s1600_s18  ;;  %p1605_p9 = scmp.lt.s32.totalorder %s2363_s6, %s2419_s3 }
 0x208   : > { %p1606_p11 = scmp.lt.s32.totalorder %s1604_s30, %s1600_s18 }
 0x209   : > { %p1602_p6 = pnand %p1601_p7, %p1788_p13 }
 0x20a   : > { %p1607_p10 = por %p1606_p11, %p1605_p9 }
 0x20b   : > { %p1603_p4 = pneg %p1602_p6 }
 0x20d   : > { %p1608_p1 = pnand %p1607_p10, %p1603_p4 }
 0x20f   : > { %1611 = shalt.err (!%p1608_p1)
}
 0x210   : > { %s1679_s24 = smov 256   ;;  %s1680_s29 = smov 16  }
 0x211   : > { %1379 = dma.vmem_to_hbm [thread:$0]  (%p1788_p13), %s2365_s4, 4096, %s2363_s6, %s905_s15, %s1679_s24, %s1679_s24, %s1680_s29  }
 0x212 PF: > { %s936_s21 = sand.u32 1, %s1650_s12   ;;  %p2517_p8 = scmp.ne.s32.totalorder %s2446_s23, 0 }
 0x213   : > { %p2518_p12 = scmp.ge.s32.totalorder %s1670_s17, 2  ;;  %s937_s5 = scalar_lea.sflag [#allocation4], %s936_s21 }
 0x215   : > { %p1390_p0 = pnand %p2518_p12, %p2517_p8 }
 0x217   : > { %p1391_p2 = pneg %p1390_p0 }
 0x219   : > { %1645 = dma.done.wait (%p1391_p2), %s937_s5, 4096  }
 0x21a   : > { %1647 = vsyncadd (%p1391_p2), %s937_s5, 4294963200  ;;  %s20_s17 = sadd.s32 1, %s1670_s17   ;;  %s2519_s12 = smov %s1654_s13 }
 0x21b   : > { %p17_p3 = scmp.ge.s32.totalorder %s20_s17, 4   ;;  %s2520_s13 = smov %s1658_s14 }
 0x21c   : > { %s2521_s14 = smov %s1797_s19  ;;  %s2522_s15 = smov %s1666_s16 }
 0x21d   : > { %s2523_s16 = smov %s2525_s28  ;;  %19 = sbr.rel (!%p17_p3) target bundleno = 7 (0x7), region = 85 }
 0x222   :  { %942 = vsyncpa [#allocation3], 1 }
 0x223   :  { %944 = vsyncpa [#allocation3 + $0x1], 1 }
 0x224   :  { %945 = vsyncpa [#allocation6], 1 }
 0x225   :  { %946 = vsyncpa [#allocation4], 1 }
 0x226   :  { %948 = vsyncpa [#allocation4 + $0x1], 1 }

</bundles_post_ra>
